<compile_context>
chip_gen: v5e
topology: v5e:2x2
jax: 0.10.0
libtpu: 0.0.40
codegen_flags: <defaults>
</compile_context>

<pallas_src>
import math
from functools import partial

import jax
import jax.numpy as jnp
from jax.experimental import pallas as pl
from jax.experimental.pallas import tpu as pltpu


def _layernorm_kernel(x_ref, g_ref, b_ref, o_ref, *, eps, inv_d):
    # x_ref: (row_tile, n_embd); g_ref/b_ref: (1, n_embd) f32 (resident blocks).
    x = x_ref[...].astype(jnp.float32)
    mu = jnp.sum(x, axis=-1, keepdims=True) * inv_d
    xc = x - mu
    var = jnp.sum(xc * xc, axis=-1, keepdims=True) * inv_d
    inv = jax.lax.rsqrt(var + eps)
    o_ref[...] = (g_ref[...] * (xc * inv) + b_ref[...]).astype(o_ref.dtype)


_SUBLANE = {4: 8, 2: 16, 1: 32}
_MIN_BLOCK_BYTES = 4 * 1024 * 1024  # target per-step input block (~<10% step overhead)


def _vmem_budgets():
    """(tile_budget_bytes, vmem_limit_bytes) sized per TPU generation."""
    cap = None
    try:
        cap = getattr(pltpu.get_tpu_info(), "vmem_capacity_bytes", None)
    except Exception:
        cap = None
    if cap is None:
        cap = 64 * 1024 * 1024  # conservative default (v7x-sized)
    if cap >= 128 * 1024 * 1024:          # v5e / v6e: 128 MiB physical VMEM
        return 72 * 1024 * 1024, 96 * 1024 * 1024
    return 32 * 1024 * 1024, 48 * 1024 * 1024  # v7x: 64 MiB per TensorCore


def _pick_row_tile(rows, n_embd, itemsize, tile_budget):
    """Dtype-aware, VMEM-budgeted row tile (sublane multiple, >=2 grid steps)."""
    sublane = _SUBLANE.get(itemsize, 8)
    if rows <= sublane:
        return rows  # single full-extent block (allowed by the (8,128) rule)
    # Per-row VMEM: double-buffered in + out tiles plus ~2 f32 live temps.
    per_row = n_embd * (4 * itemsize + 2 * 4)
    vmem_cap_rows = max(sublane, (tile_budget // per_row) // sublane * sublane)
    # Aim for ~4 MiB of input per grid step.
    target_rows = max(sublane, (_MIN_BLOCK_BYTES // (n_embd * itemsize)) // sublane * sublane)
    tile = min(vmem_cap_rows, target_rows)
    # Keep >= 2 grid steps so both v7x TensorCores get work.
    if rows > 2 * sublane:
        half = pl.cdiv(pl.cdiv(rows, 2), sublane) * sublane
        tile = min(tile, half)
    # Never exceed the whole-rows extent (floor to sublane so block <= array).
    tile = min(tile, (rows // sublane) * sublane)
    return max(sublane, (tile // sublane) * sublane)


def layer_norm(x, g, b, eps=1e-5, row_tile=None):
    """x: (..., n_embd); g, b: (n_embd,). Returns same shape/dtype as x."""
    orig_shape = x.shape
    n_embd = orig_shape[-1]
    rows = int(math.prod(orig_shape[:-1])) if len(orig_shape) > 1 else 1
    x2 = x.reshape(rows, n_embd)
    # Pre-cast g/b to f32 once (blocks are resident; avoids a per-step VPU cast).
    g2 = g.reshape(1, n_embd).astype(jnp.float32)
    b2 = b.reshape(1, n_embd).astype(jnp.float32)

    itemsize = jnp.dtype(x.dtype).itemsize
    tile_budget, vmem_limit = _vmem_budgets()
    if row_tile is None:
        row_tile = _pick_row_tile(rows, n_embd, itemsize, tile_budget)

    # Partial last block (rows % row_tile != 0) is handled by the Pallas
    # pipeline: reads of the padded tail are unspecified, writes are clipped.
    grid = (pl.cdiv(rows, row_tile),)

    kernel = partial(_layernorm_kernel, eps=float(eps), inv_d=1.0 / float(n_embd))

    out = pl.pallas_call(
        kernel,
        out_shape=jax.ShapeDtypeStruct((rows, n_embd), x.dtype),
        grid_spec=pltpu.PrefetchScalarGridSpec(
            num_scalar_prefetch=0,
            grid=grid,
            in_specs=[
                pl.BlockSpec((row_tile, n_embd), lambda i: (i, 0)),
                pl.BlockSpec((1, n_embd), lambda i: (0, 0)),  # g: resident
                pl.BlockSpec((1, n_embd), lambda i: (0, 0)),  # b: resident
            ],
            out_specs=pl.BlockSpec((row_tile, n_embd), lambda i: (i, 0)),
        ),
        compiler_params=pltpu.CompilerParams(
            dimension_semantics=("parallel",),
            vmem_limit_bytes=vmem_limit,
        ),
    )(x2, g2, b2)

    return out.reshape(orig_shape)


if __name__ == "__main__":
    # Small demo shapes; n_embd=128 keeps output stores lane-dense.
    batch, seq, n_embd = 2, 8, 128
    key = jax.random.PRNGKey(0)
    x = jax.random.normal(key, (batch, seq, n_embd), dtype=jnp.float32)

    # Parameters matching nn.Parameter(torch.ones/zeros(n_embd))
    g = jnp.ones((n_embd,), dtype=jnp.float32)
    b = jnp.zeros((n_embd,), dtype=jnp.float32)

    def ref_ln(x, g, b, eps=1e-5):
        mu = jnp.mean(x, axis=-1, keepdims=True)
        sigma = jnp.mean((x - mu) ** 2, axis=-1, keepdims=True)
        return g * ((x - mu) / jnp.sqrt(sigma + eps)) + b

    y = jax.block_until_ready(layer_norm(x, g, b, eps=1e-5))
    assert jnp.allclose(y, ref_ln(x, g, b), atol=1e-4, rtol=1e-4), "mismatch vs reference"

    # Non-divisible rows (rows = 3*5 = 15): exercises the partial-block path
    # both with the auto-sized tile and an explicit tile.
    x2 = jax.random.normal(jax.random.PRNGKey(0), (3, 5, n_embd), dtype=jnp.float32)
    y2 = jax.block_until_ready(layer_norm(x2, g, b, eps=1e-5))
    assert jnp.allclose(y2, ref_ln(x2, g, b), atol=1e-4, rtol=1e-4), "mismatch (partial, auto)"
    y3 = jax.block_until_ready(layer_norm(x2, g, b, eps=1e-5, row_tile=8))
    assert jnp.allclose(y3, ref_ln(x2, g, b), atol=1e-4, rtol=1e-4), "mismatch (partial, tile=8)"

    # bf16 I/O, f32 math path.
    xb = jax.random.normal(jax.random.PRNGKey(1), (4, 7, n_embd), dtype=jnp.bfloat16)
    yb = jax.block_until_ready(layer_norm(xb, g, b, eps=1e-5))
    refb = ref_ln(xb.astype(jnp.float32), g, b).astype(jnp.bfloat16)
    assert jnp.allclose(yb.astype(jnp.float32), refb.astype(jnp.float32),
                        atol=2e-2, rtol=2e-2), "mismatch (bf16)"

    print("KERNEL_OK")
</pallas_src>

<mosaic_0001>
module attributes {stable_mosaic.version = 11 : i64} {
  func.func @_layernorm_kernel(%arg0: i32, %arg1: memref<16x128xf32, #tpu.memory_space<vmem>>, %arg2: memref<1x128xf32, #tpu.memory_space<vmem>>, %arg3: memref<1x128xf32, #tpu.memory_space<vmem>>, %arg4: memref<16x128xf32, #tpu.memory_space<vmem>>) attributes {dimension_semantics = [#tpu.dimension_semantics<parallel>], iteration_bounds = array<i64: 1>, scalar_prefetch = 0 : i64, scratch_operands = 0 : i64, tpu.core_type = #tpu.core_type<tc>, window_params = [{transform_indices = @transform_0, window_bounds = array<i64: 16, 128>}, {pipeline_mode = #tpu.pipeline_mode<synchronous>, transform_indices = @transform_1, window_bounds = array<i64: 1, 128>}, {pipeline_mode = #tpu.pipeline_mode<synchronous>, transform_indices = @transform_2, window_bounds = array<i64: 1, 128>}, {transform_indices = @transform_3, window_bounds = array<i64: 16, 128>}]} {
    %c0 = arith.constant 0 : index
    %c0_0 = arith.constant 0 : index
    %0 = vector.load %arg1[%c0, %c0_0] : memref<16x128xf32, #tpu.memory_space<vmem>>, vector<16x128xf32>
    %cst = arith.constant dense<0.000000e+00> : vector<16xf32>
    %1 = vector.multi_reduction <add>, %0, %cst [1] : vector<16x128xf32> to vector<16xf32>
    %2 = vector.shape_cast %1 : vector<16xf32> to vector<16x1xf32>
    %cst_1 = arith.constant 7.812500e-03 : f32
    %3 = vector.broadcast %cst_1 : f32 to vector<16x1xf32>
    %4 = arith.mulf %2, %3 : vector<16x1xf32>
    %5 = vector.broadcast %4 : vector<16x1xf32> to vector<16x128xf32>
    %6 = arith.subf %0, %5 : vector<16x128xf32>
    %7 = arith.mulf %6, %6 : vector<16x128xf32>
    %cst_2 = arith.constant dense<0.000000e+00> : vector<16xf32>
    %8 = vector.multi_reduction <add>, %7, %cst_2 [1] : vector<16x128xf32> to vector<16xf32>
    %9 = vector.shape_cast %8 : vector<16xf32> to vector<16x1xf32>
    %cst_3 = arith.constant 7.812500e-03 : f32
    %10 = vector.broadcast %cst_3 : f32 to vector<16x1xf32>
    %11 = arith.mulf %9, %10 : vector<16x1xf32>
    %cst_4 = arith.constant 9.99999974E-6 : f32
    %12 = vector.broadcast %cst_4 : f32 to vector<16x1xf32>
    %13 = arith.addf %11, %12 : vector<16x1xf32>
    %14 = math.rsqrt %13 : vector<16x1xf32>
    %c0_5 = arith.constant 0 : index
    %c0_6 = arith.constant 0 : index
    %15 = vector.load %arg2[%c0_5, %c0_6] : memref<1x128xf32, #tpu.memory_space<vmem>>, vector<1x128xf32>
    %16 = vector.broadcast %14 : vector<16x1xf32> to vector<16x128xf32>
    %17 = arith.mulf %6, %16 : vector<16x128xf32>
    %18 = vector.broadcast %15 : vector<1x128xf32> to vector<16x128xf32>
    %19 = arith.mulf %18, %17 : vector<16x128xf32>
    %c0_7 = arith.constant 0 : index
    %c0_8 = arith.constant 0 : index
    %20 = vector.load %arg3[%c0_7, %c0_8] : memref<1x128xf32, #tpu.memory_space<vmem>>, vector<1x128xf32>
    %21 = vector.broadcast %20 : vector<1x128xf32> to vector<16x128xf32>
    %22 = arith.addf %19, %21 : vector<16x128xf32>
    %c0_9 = arith.constant 0 : index
    %c0_10 = arith.constant 0 : index
    %23 = vector.load %arg4[%c0_9, %c0_10] : memref<16x128xf32, #tpu.memory_space<vmem>>, vector<16x128xf32>
    tpu.vector_store %arg4[%c0_9, %c0_10], %22 {strides = array<i32>} : memref<16x128xf32, #tpu.memory_space<vmem>>, vector<16x128xf32>,
    return
  }
  func.func @transform_0(%arg0: i32) -> (i32, i32) {
    %c0_i32 = arith.constant 0 : i32
    %c0_i32_0 = arith.constant 0 : i32
    return %arg0, %c0_i32 : i32, i32
  }
  func.func @transform_1(%arg0: i32) -> (i32, i32) {
    %c0_i32 = arith.constant 0 : i32
    %c0_i32_0 = arith.constant 0 : i32
    %c0_i32_1 = arith.constant 0 : i32
    return %c0_i32, %c0_i32_0 : i32, i32
  }
  func.func @transform_2(%arg0: i32) -> (i32, i32) {
    %c0_i32 = arith.constant 0 : i32
    %c0_i32_0 = arith.constant 0 : i32
    %c0_i32_1 = arith.constant 0 : i32
    return %c0_i32, %c0_i32_0 : i32, i32
  }
  func.func @transform_3(%arg0: i32) -> (i32, i32) {
    %c0_i32 = arith.constant 0 : i32
    %c0_i32_0 = arith.constant 0 : i32
    return %arg0, %c0_i32 : i32, i32
  }
}

</mosaic_0001>

<bundles_post_ra>
// kernel: tpu_custom_call.1
= control target key start
LH: loop header
LB: loop body
LE: loop exit
PB: predicated region body
PF: predicated region fallthrough
CT: control target
= control target key end

     0   :  { %8 = vsyncpa [#allocation3], 0  ;;  %s253_s0 = inlined_call_operand.hbm [shape: f32[16,128], index: 0, kind: input, shape index: {}]   ;;  %s254_s1 = inlined_call_operand.hbm [shape: f32[1,128], index: 1, kind: input, shape index: {}]   ;;  %s255_s2 = inlined_call_operand.vmem [shape: f32[1,128], index: 2, kind: input, shape index: {}]   ;;  %s256_s3 = inlined_call_operand.hbm [shape: f32[16,128], index: 3, kind: output, shape index: {}]  }
   0x1   :  { %9 = vsyncpa [#allocation6], 0 }
   0x2   :  { %10 = vsyncpa [#allocation4], 0  ;;  %s15_s14 = sshll.u32 %s253_s0, 4  ;;  %s210_s15 = smov [#allocation2]   ;;  %s16_s14 = int_to_ptr.hbm [resolvable:$true] %s15_s14 }
   0x3   :  { %s17_s16 = sshll.u32 %s210_s15, 4  ;;  %s29_s19 = sshll.u32 %s254_s1, 4  ;;  %s18_s16 = int_to_ptr.vmem [resolvable:$true] %s17_s16  ;;  %s30_s19 = int_to_ptr.hbm [resolvable:$true] %s29_s19 }
   0x4   :  { %s211_s20 = smov 128   ;;  %s212_s21 = smov 8  }
   0x5   :  { %23 = dma.hbm_to_vmem [thread:$0]  %s16_s14, 256, %s18_s16, [#allocation3], %s211_s20, %s211_s20, %s212_s21  }
   0x6   :  { %s213_s22 = smov [#allocation5]  }
   0x7   :  { %s31_s23 = sshll.u32 %s213_s22, 4  ;;  %s32_s23 = int_to_ptr.vmem [resolvable:$true] %s31_s23 }
   0x8   :  { %34 = dma.hbm_to_vmem [thread:$0]  %s30_s19, 16, %s32_s23, [#allocation6]  }
   0x9   :  { %204 = dma.done.wait [#allocation3], 256  }
   0xa   :  { %205 = vsyncadd [#allocation3], 4294967040 }
   0xb   :  { %206 = dma.done.wait [#allocation6], 16  }
   0xc   :  { %207 = vsyncadd [#allocation6], 4294967280  ;;  %v45_v0 = vld [vmem:[#allocation2] sm:$0xff]  ;;  %v46_v1 = vld [vmem:[#allocation2 + $0x8] sm:$0xff]  ;;  %s214_s24 = smov [#allocation7]   ;;  %s107_s28 = sshll.u32 %s256_s3, 4  ;;  %s108_s28 = int_to_ptr.hbm [resolvable:$true] %s107_s28 }
   0xd   :  { %47 = vadd.xlane.f32.xlu0 %v45_v0  ;;  %v126_v24 = vld [vmem:[#allocation5] ss:$0 sm:$0xff]  ;;  %v127_v28 = vld [vmem:[%s255_s2] ss:$0 sm:$0xff]  ;;  %s105_s25 = sshll.u32 %s214_s24, 4  ;;  %s106_s25 = int_to_ptr.vmem [resolvable:$true] %s105_s25 }
  0x15   :  { %49 = vadd.xlane.f32.xlu0 %v46_v1 }
  0x80   :  { %v48_v2 = vpop.xlane.xlu0 %47 }
  0x81   :  { %v51_v3 = vmul.f32 0.0078125, %v48_v2 }
  0x83   :  { %v53_v4 = vsub.f32 %v45_v0, %v51_v3 }
  0x85   :  { %v55_v5 = vmul.f32 %v53_v4, %v53_v4 }
  0x87   :  { %57 = vadd.xlane.f32.xlu1 %v55_v5 }
  0x88   :  { %v50_v6 = vpop.xlane.xlu0 %49 }
  0x89   :  { %v52_v7 = vmul.f32 0.0078125, %v50_v6 }
  0x8b   :  { %v54_v8 = vsub.f32 %v46_v1, %v52_v7 }
  0x8d   :  { %v56_v9 = vmul.f32 %v54_v8, %v54_v8 }
  0x8f   :  { %59 = vadd.xlane.f32.xlu1 %v56_v9 }
  0xfa   :  { %v58_v10 = vpop.xlane.xlu1 %57 }
  0xfb   :  { %v61_v11 = vmul.f32 0.0078125, %v58_v10 }
  0xfd   :  { %v63_v12 = vadd.f32 1e-05, %v61_v11 }
  0xff   :  { %128 = vrsqrt.f32 %v63_v12  ;;  %vm71_vm1 = vweird.f32 %v63_v12 }
 0x102   :  { %v60_v13 = vpop.xlane.xlu1 %59 }
 0x103   :  { %v62_v14 = vmul.f32 0.0078125, %v60_v13 }
 0x105   :  { %v129_v15 = vpop.eup %128  ;;  %v64_v16 = vadd.f32 1e-05, %v62_v14 }
 0x106   :  { %v66_v17 = vmul.f32 %v129_v15, %v63_v12  ;;  %vm72_vm0 = vweird.f32 %v129_v15 }
 0x107   :  { %130 = vrsqrt.f32 %v64_v16  ;;  %vm73_vm2 = vmor %vm71_vm1, %vm72_vm0  ;;  %vm81_vm4 = vweird.f32 %v64_v16 }
 0x108   :  { %v67_v18 = vmul.f32 %v129_v15, %v66_v17 }
 0x10a   :  { %v68_v19 = vmul.f32 0.5, %v67_v18 }
 0x10c   :  { %v69_v20 = vsub.f32 1.5, %v68_v19 }
 0x10d   :  { %v131_v21 = vpop.eup %130 }
 0x10e   :  { %v70_v22 = vmul.f32 %v129_v15, %v69_v20  ;;  %v76_v23 = vmul.f32 %v131_v21, %v64_v16  ;;  %vm82_vm3 = vweird.f32 %v131_v21 }
 0x10f   :  { %vm83_vm5 = vmor %vm81_vm4, %vm82_vm3 }
 0x110   :  { %v74_v25 = vsel %vm73_vm2, %v129_v15, %v70_v22  ;;  %v77_v26 = vmul.f32 %v131_v21, %v76_v23 }
 0x111   :  { %v86_v27 = vmul.f32 %v74_v25, %v53_v4 }
 0x112   :  { %v78_v29 = vmul.f32 0.5, %v77_v26 }
 0x113   :  { %v91_v30 = vmul.f32 %v126_v24, %v86_v27 }
 0x114   :  { %v79_v31 = vsub.f32 1.5, %v78_v29 }
 0x115   :  { %v97_v32 = vadd.f32 %v127_v28, %v91_v30 }
 0x116   :  { %v80_v33 = vmul.f32 %v131_v21, %v79_v31 }
 0x117   :  { %99 = vst [vmem:[#allocation7] sm:$0xff] %v97_v32 }
 0x118   :  { %v84_v34 = vsel %vm83_vm5, %v131_v21, %v80_v33 }
 0x119   :  { %v87_v35 = vmul.f32 %v84_v34, %v54_v8 }
 0x11b   :  { %v92_v36 = vmul.f32 %v126_v24, %v87_v35 }
 0x11d   :  { %v98_v37 = vadd.f32 %v127_v28, %v92_v36 }
 0x11f   :  { %100 = vst [vmem:[#allocation7 + $0x8] sm:$0xff] %v98_v37 }
 0x120   :  { %113 = dma.vmem_to_hbm [thread:$0]  %s106_s25, 256, %s108_s28, [#allocation4], %s211_s20, %s211_s20, %s212_s21  }
 0x121   :  { %208 = dma.done.wait [#allocation4], 256  }
 0x122   :  { %209 = vsyncadd [#allocation4], 4294967040 }
 0x123   :  { %118 = vsyncpa [#allocation3], 1 }
 0x124   :  { %119 = vsyncpa [#allocation6], 1 }
 0x125   :  { %120 = vsyncpa [#allocation4], 1 }

</bundles_post_ra>
